<compile_context>
chip_gen: v5e
topology: v5e:2x2
jax: 0.10.0
libtpu: 0.0.40
codegen_flags: <defaults>
</compile_context>

<pallas_src>
import numpy as np
import jax
import jax.numpy as jnp
from jax.experimental import pallas as pl
from jax.experimental.pallas import tpu as pltpu


def _round_up(a, b):
    return -(-a // b) * b


def spectral_conv_kernel(x_ref, f_ref, wr_ref, wi_ref, g_ref, o_ref):
    # x_ref:  (c_in, tb, N)        channel-major batch tile
    # f_ref:  (N, 2*Mp)            fused forward real-DFT [cos | -sin], modes padded to Mp
    # wr/wi:  (c_in, c_out, 1, Mp) zero-padded spectral weights (singleton sublane
    #                              broadcasts against the tb sublane axis)
    # g_ref:  (2*Mp, N)            fused inverse rows [real ; imag] with 1/N and the
    #                              irfft mode-doubling factors baked in, zero-padded
    # o_ref:  (c_out, tb, N)
    c_in = x_ref.shape[0]
    c_out, tb, N = o_ref.shape
    Mp = wr_ref.shape[3]

    f = f_ref[...]                                    # (N, 2*Mp), loaded once
    out_r = jnp.zeros((c_out, tb, Mp), jnp.float32)
    out_i = jnp.zeros((c_out, tb, Mp), jnp.float32)

    # Forward DFT (MXU) + complex per-mode channel mix (VPU), accumulated over input
    # channels.  Each iteration: one (tb, N) x (N, 2*Mp) matmul plus a single
    # vectorized broadcast-MAC over the (c_out, tb, Mp) block.
    for i in range(c_in):
        xf = jnp.dot(x_ref[i], f, preferred_element_type=jnp.float32)   # (tb, 2*Mp)
        xr = xf[:, :Mp][None]                         # (1, tb, Mp)  real part
        xi = xf[:, Mp:][None]                         # (1, tb, Mp)  imag part
        wr = wr_ref[i]                                # (c_out, 1, Mp)
        wi = wi_ref[i]
        out_r = out_r + xr * wr - xi * wi             # broadcast -> (c_out, tb, Mp)
        out_i = out_i + xr * wi + xi * wr

    g = g_ref[...]                                    # (2*Mp, N), loaded once
    # Inverse DFT: one lane-dense (tb, 2*Mp) x (2*Mp, N) matmul per output channel.
    for o in range(c_out):
        spec = jnp.concatenate([out_r[o], out_i[o]], axis=-1)           # (tb, 2*Mp)
        y = jnp.dot(spec, g, preferred_element_type=jnp.float32)        # (tb, N)
        o_ref[o] = y.astype(o_ref.dtype)


def fourier_forward(x, w_real, w_imag, modes, *, block_batch=None):
    """x: (B, C_in, N) f32; w_real/w_imag: (C_in, C_out, modes) f32."""
    B, c_in, N = x.shape
    c_out = w_real.shape[1]
    assert modes <= N // 2 + 1

    LANE = 128
    SUB = 8
    Mp = _round_up(modes, LANE)                       # lane-dense padded mode count

    # ---- host-side (numpy) construction of the fused, zero-padded DFT matrices ----
    n = np.arange(N)[:, None].astype(np.float64)
    k = np.arange(modes)[None, :].astype(np.float64)
    ang = 2.0 * np.pi * n * k / N                     # (N, modes)

    # rfft (first `modes` bins):  X_r = x @ F[:, :Mp],  X_i = x @ F[:, Mp:]
    F = np.zeros((N, 2 * Mp), np.float32)
    F[:, :modes] = np.cos(ang)
    F[:, Mp:Mp + modes] = -np.sin(ang)

    # irfft with only the first `modes` bins nonzero:  y = [out_r | out_i] @ G
    # wk: hermitian doubling factor (1 for DC / Nyquist, 2 otherwise);  sin rows are 0
    # for DC / Nyquist so their imaginary parts are ignored, matching torch/np irfft.
    kk = np.arange(modes)
    wk = np.where((kk == 0) | ((N % 2 == 0) & (kk == N // 2)), 1.0, 2.0)
    G = np.zeros((2 * Mp, N), np.float32)
    G[:modes, :] = (wk[:, None] / N) * np.cos(ang.T)
    G[Mp:Mp + modes, :] = -(wk[:, None] / N) * np.sin(ang.T)

    F = jnp.asarray(F)
    G = jnp.asarray(G)

    pad_m = Mp - modes
    wr_p = jnp.pad(w_real, ((0, 0), (0, 0), (0, pad_m)))[:, :, None, :]    # (c_in, c_out, 1, Mp)
    wi_p = jnp.pad(w_imag, ((0, 0), (0, 0), (0, pad_m)))[:, :, None, :]

    # ---- batch tiling: 8-aligned sublane tiles, target 256 MXU rows, VMEM-capped ----
    if block_batch is None:
        vmem_budget = 32 * 1024 * 1024                # leave headroom under the 64 MiB limit
        bytes_per_row = 4 * (5 * c_out * Mp           # accumulators + broadcast temps
                             + 2 * Mp                 # xf spectrum
                             + 2 * (c_in + c_out) * N)  # double-buffered in/out blocks
        block_batch = max(SUB, min(256, vmem_budget // max(bytes_per_row, 1)))
    tb = max(SUB, (min(block_batch, _round_up(B, SUB)) // SUB) * SUB)
    B_pad = _round_up(B, tb)

    xt = jnp.transpose(x, (1, 0, 2))                  # (c_in, B, N) channel-major
    if B_pad != B:
        xt = jnp.pad(xt, ((0, 0), (0, B_pad - B), (0, 0)))

    out = pl.pallas_call(
        spectral_conv_kernel,
        out_shape=jax.ShapeDtypeStruct((c_out, B_pad, N), x.dtype),
        grid=(B_pad // tb,),
        in_specs=[
            pl.BlockSpec((c_in, tb, N), lambda b: (0, b, 0)),
            pl.BlockSpec((N, 2 * Mp), lambda b: (0, 0)),
            pl.BlockSpec((c_in, c_out, 1, Mp), lambda b: (0, 0, 0, 0)),
            pl.BlockSpec((c_in, c_out, 1, Mp), lambda b: (0, 0, 0, 0)),
            pl.BlockSpec((2 * Mp, N), lambda b: (0, 0)),
        ],
        out_specs=pl.BlockSpec((c_out, tb, N), lambda b: (0, b, 0)),
        compiler_params=pltpu.CompilerParams(
            dimension_semantics=("parallel",),        # batch tiles are independent
            vmem_limit_bytes=64 * 1024 * 1024,
        ),
    )(xt, F, wr_p, wi_p, G)

    return jnp.transpose(out, (1, 0, 2))[:B]          # back to (B, c_out, N)


if __name__ == "__main__":
    B, c_in, c_out, N, modes = 2, 4, 3, 16, 5

    key = jax.random.PRNGKey(0)
    k1, k2, k3 = jax.random.split(key, 3)

    scale = 1.0 / (c_in * c_out)
    x = jax.random.normal(k1, (B, c_in, N), dtype=jnp.float32)
    w_real = scale * jax.random.uniform(k2, (c_in, c_out, modes), dtype=jnp.float32)
    w_imag = scale * jax.random.uniform(k3, (c_in, c_out, modes), dtype=jnp.float32)

    y = fourier_forward(x, w_real, w_imag, modes)
    y = jax.block_until_ready(y)

    # pure-JAX reference (same semantics as torch.fft.rfft / irfft, norm='backward')
    x_ft = jnp.fft.rfft(x, axis=-1)
    w = w_real.astype(jnp.complex64) + 1j * w_imag.astype(jnp.complex64)
    out_modes = jnp.einsum('bix,iox->box', x_ft[:, :, :modes], w)
    out_ft = jnp.zeros((B, c_out, N // 2 + 1), jnp.complex64).at[:, :, :modes].set(out_modes)
    y_ref = jnp.fft.irfft(out_ft, n=N, axis=-1)

    np.testing.assert_allclose(np.asarray(y), np.asarray(y_ref), atol=2e-2, rtol=2e-2)
    print("KERNEL_OK")
</pallas_src>

<mosaic_0001>
module attributes {stable_mosaic.version = 11 : i64} {
  func.func @spectral_conv_kernel(%arg0: i32, %arg1: memref<4x8x16xf32, #tpu.memory_space<vmem>>, %arg2: memref<16x256xf32, #tpu.memory_space<vmem>>, %arg3: memref<4x3x1x128xf32, #tpu.memory_space<vmem>>, %arg4: memref<4x3x1x128xf32, #tpu.memory_space<vmem>>, %arg5: memref<256x16xf32, #tpu.memory_space<vmem>>, %arg6: memref<3x8x16xf32, #tpu.memory_space<vmem>>) attributes {dimension_semantics = [#tpu.dimension_semantics<parallel>], iteration_bounds = array<i64: 1>, scalar_prefetch = 0 : i64, scratch_operands = 0 : i64, tpu.core_type = #tpu.core_type<tc>, window_params = [{transform_indices = @transform_0, window_bounds = array<i64: 4, 8, 16>}, {pipeline_mode = #tpu.pipeline_mode<synchronous>, transform_indices = @transform_1, window_bounds = array<i64: 16, 256>}, {pipeline_mode = #tpu.pipeline_mode<synchronous>, transform_indices = @transform_2, window_bounds = array<i64: 4, 3, 1, 128>}, {pipeline_mode = #tpu.pipeline_mode<synchronous>, transform_indices = @transform_3, window_bounds = array<i64: 4, 3, 1, 128>}, {pipeline_mode = #tpu.pipeline_mode<synchronous>, transform_indices = @transform_4, window_bounds = array<i64: 256, 16>}, {transform_indices = @transform_5, window_bounds = array<i64: 3, 8, 16>}]} {
    %c0 = arith.constant 0 : index
    %c0_0 = arith.constant 0 : index
    %0 = vector.load %arg2[%c0, %c0_0] : memref<16x256xf32, #tpu.memory_space<vmem>>, vector<16x256xf32>
    %cst = arith.constant 0.000000e+00 : f32
    %1 = vector.broadcast %cst : f32 to vector<3x8x128xf32>
    %cst_1 = arith.constant 0.000000e+00 : f32
    %2 = vector.broadcast %cst_1 : f32 to vector<3x8x128xf32>
    %c0_2 = arith.constant 0 : index
    %c0_3 = arith.constant 0 : index
    %c0_4 = arith.constant 0 : index
    %3 = vector.load %arg1[%c0_2, %c0_3, %c0_4] : memref<4x8x16xf32, #tpu.memory_space<vmem>>, vector<1x8x16xf32>
    %4 = vector.shape_cast %3 : vector<1x8x16xf32> to vector<8x16xf32>
    %cst_5 = arith.constant dense<0.000000e+00> : vector<8x256xf32>
    %5 = tpu.matmul %4, %0, %cst_5 {dimension_numbers = #tpu.dot_dimension_numbers<[1], [0], [0], [1], [0, 0, 1, 1], [], []>} : vector<8x16xf32>, vector<16x256xf32>, vector<8x256xf32> -> vector<8x256xf32>
    %6 = vector.extract_strided_slice %5 {offsets = [0, 0], sizes = [8, 128], strides = [1, 1]} : vector<8x256xf32> to vector<8x128xf32>
    %7 = vector.shape_cast %6 : vector<8x128xf32> to vector<1x8x128xf32>
    %8 = vector.extract_strided_slice %5 {offsets = [0, 128], sizes = [8, 128], strides = [1, 1]} : vector<8x256xf32> to vector<8x128xf32>
    %9 = vector.shape_cast %8 : vector<8x128xf32> to vector<1x8x128xf32>
    %c0_6 = arith.constant 0 : index
    %c0_7 = arith.constant 0 : index
    %c0_8 = arith.constant 0 : index
    %c0_9 = arith.constant 0 : index
    %10 = vector.load %arg3[%c0_6, %c0_7, %c0_8, %c0_9] : memref<4x3x1x128xf32, #tpu.memory_space<vmem>>, vector<1x3x1x128xf32>
    %11 = vector.shape_cast %10 : vector<1x3x1x128xf32> to vector<3x1x128xf32>
    %c0_10 = arith.constant 0 : index
    %c0_11 = arith.constant 0 : index
    %c0_12 = arith.constant 0 : index
    %c0_13 = arith.constant 0 : index
    %12 = vector.load %arg4[%c0_10, %c0_11, %c0_12, %c0_13] : memref<4x3x1x128xf32, #tpu.memory_space<vmem>>, vector<1x3x1x128xf32>
    %13 = vector.shape_cast %12 : vector<1x3x1x128xf32> to vector<3x1x128xf32>
    %14 = vector.broadcast %7 : vector<1x8x128xf32> to vector<3x8x128xf32>
    %15 = vector.broadcast %11 : vector<3x1x128xf32> to vector<3x8x128xf32>
    %16 = arith.mulf %14, %15 : vector<3x8x128xf32>
    %17 = arith.addf %1, %16 : vector<3x8x128xf32>
    %18 = vector.broadcast %9 : vector<1x8x128xf32> to vector<3x8x128xf32>
    %19 = vector.broadcast %13 : vector<3x1x128xf32> to vector<3x8x128xf32>
    %20 = arith.mulf %18, %19 : vector<3x8x128xf32>
    %21 = arith.subf %17, %20 : vector<3x8x128xf32>
    %22 = vector.broadcast %7 : vector<1x8x128xf32> to vector<3x8x128xf32>
    %23 = vector.broadcast %13 : vector<3x1x128xf32> to vector<3x8x128xf32>
    %24 = arith.mulf %22, %23 : vector<3x8x128xf32>
    %25 = arith.addf %2, %24 : vector<3x8x128xf32>
    %26 = vector.broadcast %9 : vector<1x8x128xf32> to vector<3x8x128xf32>
    %27 = vector.broadcast %11 : vector<3x1x128xf32> to vector<3x8x128xf32>
    %28 = arith.mulf %26, %27 : vector<3x8x128xf32>
    %29 = arith.addf %25, %28 : vector<3x8x128xf32>
    %c1 = arith.constant 1 : index
    %c0_14 = arith.constant 0 : index
    %c0_15 = arith.constant 0 : index
    %30 = vector.load %arg1[%c1, %c0_14, %c0_15] : memref<4x8x16xf32, #tpu.memory_space<vmem>>, vector<1x8x16xf32>
    %31 = vector.shape_cast %30 : vector<1x8x16xf32> to vector<8x16xf32>
    %cst_16 = arith.constant dense<0.000000e+00> : vector<8x256xf32>
    %32 = tpu.matmul %31, %0, %cst_16 {dimension_numbers = #tpu.dot_dimension_numbers<[1], [0], [0], [1], [0, 0, 1, 1], [], []>} : vector<8x16xf32>, vector<16x256xf32>, vector<8x256xf32> -> vector<8x256xf32>
    %33 = vector.extract_strided_slice %32 {offsets = [0, 0], sizes = [8, 128], strides = [1, 1]} : vector<8x256xf32> to vector<8x128xf32>
    %34 = vector.shape_cast %33 : vector<8x128xf32> to vector<1x8x128xf32>
    %35 = vector.extract_strided_slice %32 {offsets = [0, 128], sizes = [8, 128], strides = [1, 1]} : vector<8x256xf32> to vector<8x128xf32>
    %36 = vector.shape_cast %35 : vector<8x128xf32> to vector<1x8x128xf32>
    %c1_17 = arith.constant 1 : index
    %c0_18 = arith.constant 0 : index
    %c0_19 = arith.constant 0 : index
    %c0_20 = arith.constant 0 : index
    %37 = vector.load %arg3[%c1_17, %c0_18, %c0_19, %c0_20] : memref<4x3x1x128xf32, #tpu.memory_space<vmem>>, vector<1x3x1x128xf32>
    %38 = vector.shape_cast %37 : vector<1x3x1x128xf32> to vector<3x1x128xf32>
    %c1_21 = arith.constant 1 : index
    %c0_22 = arith.constant 0 : index
    %c0_23 = arith.constant 0 : index
    %c0_24 = arith.constant 0 : index
    %39 = vector.load %arg4[%c1_21, %c0_22, %c0_23, %c0_24] : memref<4x3x1x128xf32, #tpu.memory_space<vmem>>, vector<1x3x1x128xf32>
    %40 = vector.shape_cast %39 : vector<1x3x1x128xf32> to vector<3x1x128xf32>
    %41 = vector.broadcast %34 : vector<1x8x128xf32> to vector<3x8x128xf32>
    %42 = vector.broadcast %38 : vector<3x1x128xf32> to vector<3x8x128xf32>
    %43 = arith.mulf %41, %42 : vector<3x8x128xf32>
    %44 = arith.addf %21, %43 : vector<3x8x128xf32>
    %45 = vector.broadcast %36 : vector<1x8x128xf32> to vector<3x8x128xf32>
    %46 = vector.broadcast %40 : vector<3x1x128xf32> to vector<3x8x128xf32>
    %47 = arith.mulf %45, %46 : vector<3x8x128xf32>
    %48 = arith.subf %44, %47 : vector<3x8x128xf32>
    %49 = vector.broadcast %34 : vector<1x8x128xf32> to vector<3x8x128xf32>
    %50 = vector.broadcast %40 : vector<3x1x128xf32> to vector<3x8x128xf32>
    %51 = arith.mulf %49, %50 : vector<3x8x128xf32>
    %52 = arith.addf %29, %51 : vector<3x8x128xf32>
    %53 = vector.broadcast %36 : vector<1x8x128xf32> to vector<3x8x128xf32>
    %54 = vector.broadcast %38 : vector<3x1x128xf32> to vector<3x8x128xf32>
    %55 = arith.mulf %53, %54 : vector<3x8x128xf32>
    %56 = arith.addf %52, %55 : vector<3x8x128xf32>
    %c2 = arith.constant 2 : index
    %c0_25 = arith.constant 0 : index
    %c0_26 = arith.constant 0 : index
    %57 = vector.load %arg1[%c2, %c0_25, %c0_26] : memref<4x8x16xf32, #tpu.memory_space<vmem>>, vector<1x8x16xf32>
    %58 = vector.shape_cast %57 : vector<1x8x16xf32> to vector<8x16xf32>
    %cst_27 = arith.constant dense<0.000000e+00> : vector<8x256xf32>
    %59 = tpu.matmul %58, %0, %cst_27 {dimension_numbers = #tpu.dot_dimension_numbers<[1], [0], [0], [1], [0, 0, 1, 1], [], []>} : vector<8x16xf32>, vector<16x256xf32>, vector<8x256xf32> -> vector<8x256xf32>
    %60 = vector.extract_strided_slice %59 {offsets = [0, 0], sizes = [8, 128], strides = [1, 1]} : vector<8x256xf32> to vector<8x128xf32>
    %61 = vector.shape_cast %60 : vector<8x128xf32> to vector<1x8x128xf32>
    %62 = vector.extract_strided_slice %59 {offsets = [0, 128], sizes = [8, 128], strides = [1, 1]} : vector<8x256xf32> to vector<8x128xf32>
    %63 = vector.shape_cast %62 : vector<8x128xf32> to vector<1x8x128xf32>
    %c2_28 = arith.constant 2 : index
    %c0_29 = arith.constant 0 : index
    %c0_30 = arith.constant 0 : index
    %c0_31 = arith.constant 0 : index
    %64 = vector.load %arg3[%c2_28, %c0_29, %c0_30, %c0_31] : memref<4x3x1x128xf32, #tpu.memory_space<vmem>>, vector<1x3x1x128xf32>
    %65 = vector.shape_cast %64 : vector<1x3x1x128xf32> to vector<3x1x128xf32>
    %c2_32 = arith.constant 2 : index
    %c0_33 = arith.constant 0 : index
    %c0_34 = arith.constant 0 : index
    %c0_35 = arith.constant 0 : index
    %66 = vector.load %arg4[%c2_32, %c0_33, %c0_34, %c0_35] : memref<4x3x1x128xf32, #tpu.memory_space<vmem>>, vector<1x3x1x128xf32>
    %67 = vector.shape_cast %66 : vector<1x3x1x128xf32> to vector<3x1x128xf32>
    %68 = vector.broadcast %61 : vector<1x8x128xf32> to vector<3x8x128xf32>
    %69 = vector.broadcast %65 : vector<3x1x128xf32> to vector<3x8x128xf32>
    %70 = arith.mulf %68, %69 : vector<3x8x128xf32>
    %71 = arith.addf %48, %70 : vector<3x8x128xf32>
    %72 = vector.broadcast %63 : vector<1x8x128xf32> to vector<3x8x128xf32>
    %73 = vector.broadcast %67 : vector<3x1x128xf32> to vector<3x8x128xf32>
    %74 = arith.mulf %72, %73 : vector<3x8x128xf32>
    %75 = arith.subf %71, %74 : vector<3x8x128xf32>
    %76 = vector.broadcast %61 : vector<1x8x128xf32> to vector<3x8x128xf32>
    %77 = vector.broadcast %67 : vector<3x1x128xf32> to vector<3x8x128xf32>
    %78 = arith.mulf %76, %77 : vector<3x8x128xf32>
    %79 = arith.addf %56, %78 : vector<3x8x128xf32>
    %80 = vector.broadcast %63 : vector<1x8x128xf32> to vector<3x8x128xf32>
    %81 = vector.broadcast %65 : vector<3x1x128xf32> to vector<3x8x128xf32>
    %82 = arith.mulf %80, %81 : vector<3x8x128xf32>
    %83 = arith.addf %79, %82 : vector<3x8x128xf32>
    %c3 = arith.constant 3 : index
    %c0_36 = arith.constant 0 : index
    %c0_37 = arith.constant 0 : index
    %84 = vector.load %arg1[%c3, %c0_36, %c0_37] : memref<4x8x16xf32, #tpu.memory_space<vmem>>, vector<1x8x16xf32>
    %85 = vector.shape_cast %84 : vector<1x8x16xf32> to vector<8x16xf32>
    %cst_38 = arith.constant dense<0.000000e+00> : vector<8x256xf32>
    %86 = tpu.matmul %85, %0, %cst_38 {dimension_numbers = #tpu.dot_dimension_numbers<[1], [0], [0], [1], [0, 0, 1, 1], [], []>} : vector<8x16xf32>, vector<16x256xf32>, vector<8x256xf32> -> vector<8x256xf32>
    %87 = vector.extract_strided_slice %86 {offsets = [0, 0], sizes = [8, 128], strides = [1, 1]} : vector<8x256xf32> to vector<8x128xf32>
    %88 = vector.shape_cast %87 : vector<8x128xf32> to vector<1x8x128xf32>
    %89 = vector.extract_strided_slice %86 {offsets = [0, 128], sizes = [8, 128], strides = [1, 1]} : vector<8x256xf32> to vector<8x128xf32>
    %90 = vector.shape_cast %89 : vector<8x128xf32> to vector<1x8x128xf32>
    %c3_39 = arith.constant 3 : index
    %c0_40 = arith.constant 0 : index
    %c0_41 = arith.constant 0 : index
    %c0_42 = arith.constant 0 : index
    %91 = vector.load %arg3[%c3_39, %c0_40, %c0_41, %c0_42] : memref<4x3x1x128xf32, #tpu.memory_space<vmem>>, vector<1x3x1x128xf32>
    %92 = vector.shape_cast %91 : vector<1x3x1x128xf32> to vector<3x1x128xf32>
    %c3_43 = arith.constant 3 : index
    %c0_44 = arith.constant 0 : index
    %c0_45 = arith.constant 0 : index
    %c0_46 = arith.constant 0 : index
    %93 = vector.load %arg4[%c3_43, %c0_44, %c0_45, %c0_46] : memref<4x3x1x128xf32, #tpu.memory_space<vmem>>, vector<1x3x1x128xf32>
    %94 = vector.shape_cast %93 : vector<1x3x1x128xf32> to vector<3x1x128xf32>
    %95 = vector.broadcast %88 : vector<1x8x128xf32> to vector<3x8x128xf32>
    %96 = vector.broadcast %92 : vector<3x1x128xf32> to vector<3x8x128xf32>
    %97 = arith.mulf %95, %96 : vector<3x8x128xf32>
    %98 = arith.addf %75, %97 : vector<3x8x128xf32>
    %99 = vector.broadcast %90 : vector<1x8x128xf32> to vector<3x8x128xf32>
    %100 = vector.broadcast %94 : vector<3x1x128xf32> to vector<3x8x128xf32>
    %101 = arith.mulf %99, %100 : vector<3x8x128xf32>
    %102 = arith.subf %98, %101 : vector<3x8x128xf32>
    %103 = vector.broadcast %88 : vector<1x8x128xf32> to vector<3x8x128xf32>
    %104 = vector.broadcast %94 : vector<3x1x128xf32> to vector<3x8x128xf32>
    %105 = arith.mulf %103, %104 : vector<3x8x128xf32>
    %106 = arith.addf %83, %105 : vector<3x8x128xf32>
    %107 = vector.broadcast %90 : vector<1x8x128xf32> to vector<3x8x128xf32>
    %108 = vector.broadcast %92 : vector<3x1x128xf32> to vector<3x8x128xf32>
    %109 = arith.mulf %107, %108 : vector<3x8x128xf32>
    %110 = arith.addf %106, %109 : vector<3x8x128xf32>
    %c0_47 = arith.constant 0 : index
    %c0_48 = arith.constant 0 : index
    %111 = vector.load %arg5[%c0_47, %c0_48] : memref<256x16xf32, #tpu.memory_space<vmem>>, vector<256x16xf32>
    %112 = vector.extract_strided_slice %102 {offsets = [0, 0, 0], sizes = [1, 8, 128], strides = [1, 1, 1]} : vector<3x8x128xf32> to vector<1x8x128xf32>
    %113 = vector.shape_cast %112 : vector<1x8x128xf32> to vector<8x128xf32>
    %114 = vector.extract_strided_slice %110 {offsets = [0, 0, 0], sizes = [1, 8, 128], strides = [1, 1, 1]} : vector<3x8x128xf32> to vector<1x8x128xf32>
    %115 = vector.shape_cast %114 : vector<1x8x128xf32> to vector<8x128xf32>
    %116 = tpu.concatenate %113, %115 in 1 : vector<8x128xf32>, vector<8x128xf32> -> vector<8x256xf32>
    %cst_49 = arith.constant dense<0.000000e+00> : vector<8x16xf32>
    %117 = tpu.matmul %116, %111, %cst_49 {dimension_numbers = #tpu.dot_dimension_numbers<[1], [0], [0], [1], [0, 0, 1, 1], [], []>} : vector<8x256xf32>, vector<256x16xf32>, vector<8x16xf32> -> vector<8x16xf32>
    %c0_50 = arith.constant 0 : index
    %c0_51 = arith.constant 0 : index
    %c0_52 = arith.constant 0 : index
    %118 = vector.load %arg6[%c0_50, %c0_51, %c0_52] : memref<3x8x16xf32, #tpu.memory_space<vmem>>, vector<1x8x16xf32>
    %119 = vector.shape_cast %118 : vector<1x8x16xf32> to vector<8x16xf32>
    %120 = vector.shape_cast %117 : vector<8x16xf32> to vector<1x8x16xf32>
    tpu.vector_store %arg6[%c0_50, %c0_51, %c0_52], %120 {strides = array<i32>} : memref<3x8x16xf32, #tpu.memory_space<vmem>>, vector<1x8x16xf32>,
    %121 = vector.extract_strided_slice %102 {offsets = [1, 0, 0], sizes = [1, 8, 128], strides = [1, 1, 1]} : vector<3x8x128xf32> to vector<1x8x128xf32>
    %122 = vector.shape_cast %121 : vector<1x8x128xf32> to vector<8x128xf32>
    %123 = vector.extract_strided_slice %110 {offsets = [1, 0, 0], sizes = [1, 8, 128], strides = [1, 1, 1]} : vector<3x8x128xf32> to vector<1x8x128xf32>
    %124 = vector.shape_cast %123 : vector<1x8x128xf32> to vector<8x128xf32>
    %125 = tpu.concatenate %122, %124 in 1 : vector<8x128xf32>, vector<8x128xf32> -> vector<8x256xf32>
    %cst_53 = arith.constant dense<0.000000e+00> : vector<8x16xf32>
    %126 = tpu.matmul %125, %111, %cst_53 {dimension_numbers = #tpu.dot_dimension_numbers<[1], [0], [0], [1], [0, 0, 1, 1], [], []>} : vector<8x256xf32>, vector<256x16xf32>, vector<8x16xf32> -> vector<8x16xf32>
    %c1_54 = arith.constant 1 : index
    %c0_55 = arith.constant 0 : index
    %c0_56 = arith.constant 0 : index
    %127 = vector.load %arg6[%c1_54, %c0_55, %c0_56] : memref<3x8x16xf32, #tpu.memory_space<vmem>>, vector<1x8x16xf32>
    %128 = vector.shape_cast %127 : vector<1x8x16xf32> to vector<8x16xf32>
    %129 = vector.shape_cast %126 : vector<8x16xf32> to vector<1x8x16xf32>
    tpu.vector_store %arg6[%c1_54, %c0_55, %c0_56], %129 {strides = array<i32>} : memref<3x8x16xf32, #tpu.memory_space<vmem>>, vector<1x8x16xf32>,
    %130 = vector.extract_strided_slice %102 {offsets = [2, 0, 0], sizes = [1, 8, 128], strides = [1, 1, 1]} : vector<3x8x128xf32> to vector<1x8x128xf32>
    %131 = vector.shape_cast %130 : vector<1x8x128xf32> to vector<8x128xf32>
    %132 = vector.extract_strided_slice %110 {offsets = [2, 0, 0], sizes = [1, 8, 128], strides = [1, 1, 1]} : vector<3x8x128xf32> to vector<1x8x128xf32>
    %133 = vector.shape_cast %132 : vector<1x8x128xf32> to vector<8x128xf32>
    %134 = tpu.concatenate %131, %133 in 1 : vector<8x128xf32>, vector<8x128xf32> -> vector<8x256xf32>
    %cst_57 = arith.constant dense<0.000000e+00> : vector<8x16xf32>
    %135 = tpu.matmul %134, %111, %cst_57 {dimension_numbers = #tpu.dot_dimension_numbers<[1], [0], [0], [1], [0, 0, 1, 1], [], []>} : vector<8x256xf32>, vector<256x16xf32>, vector<8x16xf32> -> vector<8x16xf32>
    %c2_58 = arith.constant 2 : index
    %c0_59 = arith.constant 0 : index
    %c0_60 = arith.constant 0 : index
    %136 = vector.load %arg6[%c2_58, %c0_59, %c0_60] : memref<3x8x16xf32, #tpu.memory_space<vmem>>, vector<1x8x16xf32>
    %137 = vector.shape_cast %136 : vector<1x8x16xf32> to vector<8x16xf32>
    %138 = vector.shape_cast %135 : vector<8x16xf32> to vector<1x8x16xf32>
    tpu.vector_store %arg6[%c2_58, %c0_59, %c0_60], %138 {strides = array<i32>} : memref<3x8x16xf32, #tpu.memory_space<vmem>>, vector<1x8x16xf32>,
    return
  }
  func.func @transform_0(%arg0: i32) -> (i32, i32, i32) {
    %c0_i32 = arith.constant 0 : i32
    %c0_i32_0 = arith.constant 0 : i32
    %c0_i32_1 = arith.constant 0 : i32
    return %c0_i32, %arg0, %c0_i32_0 : i32, i32, i32
  }
  func.func @transform_1(%arg0: i32) -> (i32, i32) {
    %c0_i32 = arith.constant 0 : i32
    %c0_i32_0 = arith.constant 0 : i32
    %c0_i32_1 = arith.constant 0 : i32
    return %c0_i32, %c0_i32_0 : i32, i32
  }
  func.func @transform_2(%arg0: i32) -> (i32, i32, i32, i32) {
    %c0_i32 = arith.constant 0 : i32
    %c0_i32_0 = arith.constant 0 : i32
    %c0_i32_1 = arith.constant 0 : i32
    %c0_i32_2 = arith.constant 0 : i32
    %c0_i32_3 = arith.constant 0 : i32
    return %c0_i32, %c0_i32_0, %c0_i32_1, %c0_i32_2 : i32, i32, i32, i32
  }
  func.func @transform_3(%arg0: i32) -> (i32, i32, i32, i32) {
    %c0_i32 = arith.constant 0 : i32
    %c0_i32_0 = arith.constant 0 : i32
    %c0_i32_1 = arith.constant 0 : i32
    %c0_i32_2 = arith.constant 0 : i32
    %c0_i32_3 = arith.constant 0 : i32
    return %c0_i32, %c0_i32_0, %c0_i32_1, %c0_i32_2 : i32, i32, i32, i32
  }
  func.func @transform_4(%arg0: i32) -> (i32, i32) {
    %c0_i32 = arith.constant 0 : i32
    %c0_i32_0 = arith.constant 0 : i32
    %c0_i32_1 = arith.constant 0 : i32
    return %c0_i32, %c0_i32_0 : i32, i32
  }
  func.func @transform_5(%arg0: i32) -> (i32, i32, i32) {
    %c0_i32 = arith.constant 0 : i32
    %c0_i32_0 = arith.constant 0 : i32
    %c0_i32_1 = arith.constant 0 : i32
    return %c0_i32, %arg0, %c0_i32_0 : i32, i32, i32
  }
}

</mosaic_0001>

<bundles_post_ra>
// kernel: tpu_custom_call.1
= control target key start
LH: loop header
LB: loop body
LE: loop exit
PB: predicated region body
PF: predicated region fallthrough
CT: control target
= control target key end

     0   :  { %vm26_vm0 = vcmask 130048   ;;  %s1029_s0 = inlined_call_operand.vmem [shape: f32[4,8,16], index: 0, kind: input, shape index: {}]   ;;  %s1030_s1 = inlined_call_operand.vmem [shape: f32[16,256], index: 1, kind: input, shape index: {}]   ;;  %s1031_s2 = inlined_call_operand.vmem [shape: f32[4,3,1,128], index: 2, kind: input, shape index: {}]   ;;  %s1032_s3 = inlined_call_operand.vmem [shape: f32[4,3,1,128], index: 3, kind: input, shape index: {}]   ;;  %s1033_s4 = inlined_call_operand.vmem [shape: f32[256,16], index: 4, kind: input, shape index: {}]   ;;  %s1034_s5 = inlined_call_operand.hbm [shape: f32[3,8,16], index: 5, kind: output, shape index: {}]  }
   0x1   :  { %v23_v0 = vld [vmem:[%s1030_s1 + $0x10] sm:$0xff]  ;;  %v24_v1 = vld [vmem:[%s1030_s1 + $0x18] sm:$0xff]  ;;  %v21_v2 = vld [vmem:[%s1030_s1] sm:$0xff] }
   0x2   :  { %44 = vmatpush.msra.mxu2 %v23_v0  ;;  %64 = vmatpush.msra.mxu3 %v24_v1  ;;  %v22_v3 = vld [vmem:[%s1030_s1 + $0x8] sm:$0xff]  ;;  %v25_v4 = vld [vmem:[%s1029_s0] sm:$0xff]  ;;  %v711_v5 = vld [vmem:[%s1033_s4 + $0x78] sm:$0xff] }
   0x3   :  { %v716_v6 = vld [vmem:[%s1033_s4 + $0xf8] sm:$0xff]  ;;  %435 = vmatpush.msra.mxu0 %v711_v5  ;;  %v725_v7 = vld [vmem:[%s1033_s4 + $0x70] sm:$0xff]  ;;  %v735_v9 = vld [vmem:[%s1033_s4 + $0x68] sm:$0xff] }
   0x4   :  { %45 = vmatpush.msra.mxu2 %v21_v2  ;;  %65 = vmatpush.msra.mxu3 %v22_v3  ;;  %v730_v8 = vld [vmem:[%s1033_s4 + $0xf0] sm:$0xff]  ;;  %v740_v10 = vld [vmem:[%s1033_s4 + $0xe8] sm:$0xff]  ;;  %v750_v12 = vld [vmem:[%s1033_s4 + $0x60] sm:$0xff] }
   0x5   :  { %578 = vmatmul.msk.f32.vlgmr.msra.gmra.mxu2 %vm26_vm0, %v25_v4  ;;  %579 = vmatmul.msk.f32.vlgmr.msra.gmra.mxu3 %vm26_vm0, %v25_v4  ;;  %v580_v11 = vld [vmem:[%s1029_s0 + $0x8] sm:$0xff]  ;;  %v755_v13 = vld [vmem:[%s1033_s4 + $0xe0] sm:$0xff]  ;;  %v762_v14 = vld [vmem:[%s1033_s4 + $0x58] sm:$0xff] }
   0x6   :  { %137 = vmatpush.msrb.mxu2 %v23_v0  ;;  %157 = vmatpush.msrb.mxu3 %v24_v1  ;;  %v767_v15 = vld [vmem:[%s1033_s4 + $0xd8] sm:$0xff]  ;;  %v774_v16 = vld [vmem:[%s1033_s4 + $0x50] sm:$0xff]  ;;  %v791_v19 = vld [vmem:[%s1033_s4 + $0x48] sm:$0xff] }
   0x7   :  { %455 = vmatpush.msra.mxu1 %v716_v6  ;;  %436 = vmatpush.msra.mxu0 %v725_v7  ;;  %v779_v17 = vld [vmem:[%s1033_s4 + $0xd0] sm:$0xff]  ;;  %v796_v20 = vld [vmem:[%s1033_s4 + $0xc8] sm:$0xff] }
   0x8   :  { %138 = vmatpush.msrb.mxu2 %v21_v2  ;;  %158 = vmatpush.msrb.mxu3 %v22_v3  ;;  %v589_v18 = vld [vmem:[%s1029_s0 + $0x10] sm:$0xff] }
   0x9   :  { %456 = vmatpush.msra.mxu1 %v730_v8  ;;  %437 = vmatpush.msra.mxu0 %v735_v9 }
   0xa   :  { %232 = vmatpush.msra.mxu2 %v23_v0  ;;  %252 = vmatpush.msra.mxu3 %v24_v1 }
   0xb   :  { %457 = vmatpush.msra.mxu1 %v740_v10  ;;  %438 = vmatpush.msra.mxu0 %v750_v12 }
   0xc   :  { %233 = vmatpush.msra.mxu2 %v21_v2  ;;  %253 = vmatpush.msra.mxu3 %v22_v3 }
   0xd   :  { %581 = vmatmul.msk.f32.vlgmr.msrb.gmra.mxu2 %vm26_vm0, %v580_v11  ;;  %582 = vmatmul.msk.f32.vlgmr.msrb.gmra.mxu3 %vm26_vm0, %v580_v11 }
   0xe   :  { %327 = vmatpush.msrb.mxu2 %v23_v0  ;;  %347 = vmatpush.msrb.mxu3 %v24_v1 }
   0xf   :  { %458 = vmatpush.msra.mxu1 %v755_v13  ;;  %439 = vmatpush.msra.mxu0 %v762_v14 }
  0x10   :  { %328 = vmatpush.msrb.mxu2 %v21_v2  ;;  %348 = vmatpush.msrb.mxu3 %v22_v3 }
  0x11   :  { %459 = vmatpush.msra.mxu1 %v767_v15  ;;  %440 = vmatpush.msra.mxu0 %v774_v16 }
  0x13   :  { %460 = vmatpush.msra.mxu1 %v779_v17 }
  0x14   :  { %10 = vsyncpa [#allocation3], 0  ;;  %v805_v21 = vld [vmem:[%s1033_s4 + $0x40] sm:$0xff]  ;;  %441 = vmatpush.msra.mxu0 %v791_v19  ;;  %v817_v23 = vld [vmem:[%s1033_s4 + $0x38] sm:$0xff]  ;;  %s566_s13 = sshll.u32 %s1034_s5, 4  ;;  %s661_s14 = smov 128   ;;  %s567_s13 = int_to_ptr.hbm [resolvable:$true] %s566_s13 }
  0x15   :  { %590 = vmatmul.msk.f32.vlgmr.msra.gmra.mxu2 %vm26_vm0, %v589_v18  ;;  %591 = vmatmul.msk.f32.vlgmr.msra.gmra.mxu3 %vm26_vm0, %v589_v18  ;;  %v810_v22 = vld [vmem:[%s1033_s4 + $0xc0] sm:$0xff]  ;;  %v822_v24 = vld [vmem:[%s1033_s4 + $0xb8] sm:$0xff]  ;;  %v831_v25 = vld [vmem:[%s1033_s4 + $0x30] sm:$0xff]  ;;  %s662_s15 = smov 8  }
  0x16   :  { %461 = vmatpush.msra.mxu1 %v796_v20  ;;  %476 = vmatpush.msra.mxu2 %v711_v5  ;;  %v836_v26 = vld [vmem:[%s1033_s4 + $0xb0] sm:$0xff]  ;;  %v598_v27 = vld [vmem:[%s1029_s0 + $0x18] sm:$0xff]  ;;  %v848_v28 = vld [vmem:[%s1033_s4 + $0x28] sm:$0xff] }
  0x17   :  { %496 = vmatpush.msra.mxu3 %v716_v6  ;;  %442 = vmatpush.msra.mxu0 %v805_v21  ;;  %v853_v29 = vld [vmem:[%s1033_s4 + $0xa8] sm:$0xff]  ;;  %v864_v30 = vld [vmem:[%s1033_s4 + $0x20] sm:$0xff]  ;;  %v406_v32 = vld [vmem:[%s1033_s4 + $0x18] sm:$0xff] }
  0x18   :  { %462 = vmatpush.msra.mxu1 %v810_v22  ;;  %477 = vmatpush.msra.mxu2 %v725_v7  ;;  %v869_v31 = vld [vmem:[%s1033_s4 + $0xa0] sm:$0xff]  ;;  %v422_v33 = vld [vmem:[%s1033_s4 + $0x98] sm:$0xff]  ;;  %v405_v34 = vld [vmem:[%s1033_s4 + $0x10] sm:$0xff] }
  0x19   :  { %497 = vmatpush.msra.mxu3 %v730_v8  ;;  %443 = vmatpush.msra.mxu0 %v817_v23  ;;  %v421_v35 = vld [vmem:[%s1033_s4 + $0x90] sm:$0xff]  ;;  %v404_v36 = vld [vmem:[%s1033_s4 + $0x8] sm:$0xff]  ;;  %v914_v38 = vld [vmem:[%s1033_s4] sm:$0xff] }
  0x1a   :  { %463 = vmatpush.msra.mxu1 %v822_v24  ;;  %478 = vmatpush.msra.mxu2 %v735_v9  ;;  %v420_v37 = vld [vmem:[%s1033_s4 + $0x88] sm:$0xff]  ;;  %v919_v39 = vld [vmem:[%s1033_s4 + $0x80] sm:$0xff] }
  0x1b   :  { %498 = vmatpush.msra.mxu3 %v740_v10  ;;  %444 = vmatpush.msra.mxu0 %v831_v25  ;;  %v610_v42 = vld [vmem:[%s1031_s2] ss:$0 sm:$0xff]  ;;  %v611_v43 = vld [vmem:[%s1031_s2 + $0x1] ss:$0 sm:$0xff]  ;;  %v612_v44 = vld [vmem:[%s1031_s2 + $0x2] ss:$0 sm:$0xff] }
  0x1c   :  { %464 = vmatpush.msra.mxu1 %v836_v26  ;;  %479 = vmatpush.msra.mxu2 %v750_v12  ;;  %v614_v45 = vld [vmem:[%s1032_s3 + $0x1] ss:$0 sm:$0xff]  ;;  %v613_v46 = vld [vmem:[%s1032_s3] ss:$0 sm:$0xff]  ;;  %v615_v47 = vld [vmem:[%s1032_s3 + $0x2] ss:$0 sm:$0xff] }
  0x1d   :  { %599 = vmatmul.msk.f32.vlgmr.msrb.gmra.mxu2 %vm26_vm0, %v598_v27  ;;  %600 = vmatmul.msk.f32.vlgmr.msrb.gmra.mxu3 %vm26_vm0, %v598_v27  ;;  %v617_v48 = vld [vmem:[%s1031_s2 + $0x4] ss:$0 sm:$0xff]  ;;  %v616_v53 = vld [vmem:[%s1031_s2 + $0x3] ss:$0 sm:$0xff]  ;;  %v618_v1 = vld [vmem:[%s1031_s2 + $0x5] ss:$0 sm:$0xff] }
  0x1e   :  { %445 = vmatpush.msra.mxu0 %v848_v28  ;;  %465 = vmatpush.msra.mxu1 %v853_v29  ;;  %v619_v54 = vld [vmem:[%s1032_s3 + $0x3] ss:$0 sm:$0xff]  ;;  %v620_v55 = vld [vmem:[%s1032_s3 + $0x4] ss:$0 sm:$0xff]  ;;  %v621_v2 = vld [vmem:[%s1032_s3 + $0x5] ss:$0 sm:$0xff] }
  0x1f   :  { %499 = vmatpush.msra.mxu3 %v755_v13  ;;  %480 = vmatpush.msra.mxu2 %v762_v14 }
  0x20   :  { %446 = vmatpush.msra.mxu0 %v864_v30  ;;  %466 = vmatpush.msra.mxu1 %v869_v31 }
  0x21   :  { %500 = vmatpush.msra.mxu3 %v767_v15  ;;  %481 = vmatpush.msra.mxu2 %v774_v16 }
  0x22   :  { %447 = vmatpush.msra.mxu0 %v406_v32  ;;  %467 = vmatpush.msra.mxu1 %v422_v33 }
  0x23   :  { %501 = vmatpush.msra.mxu3 %v779_v17  ;;  %482 = vmatpush.msra.mxu2 %v791_v19 }
  0x24   :  { %448 = vmatpush.msra.mxu0 %v405_v34  ;;  %468 = vmatpush.msra.mxu1 %v421_v35 }
  0x25   :  { %502 = vmatpush.msra.mxu3 %v796_v20  ;;  %483 = vmatpush.msra.mxu2 %v805_v21 }
  0x26   :  { %449 = vmatpush.msra.mxu0 %v404_v36  ;;  %469 = vmatpush.msra.mxu1 %v420_v37 }
  0x27   :  { %503 = vmatpush.msra.mxu3 %v810_v22  ;;  %484 = vmatpush.msra.mxu2 %v817_v23 }
  0x28   :  { %450 = vmatpush.msra.mxu0 %v914_v38  ;;  %470 = vmatpush.msra.mxu1 %v919_v39 }
  0x29   :  { %504 = vmatpush.msra.mxu3 %v822_v24  ;;  %485 = vmatpush.msra.mxu2 %v831_v25 }
  0x2a   :  { %518 = vmatpush.msrb.mxu0 %v711_v5  ;;  %538 = vmatpush.msrb.mxu1 %v716_v6 }
  0x2b   :  { %505 = vmatpush.msra.mxu3 %v836_v26  ;;  %486 = vmatpush.msra.mxu2 %v848_v28 }
  0x2c   :  { %519 = vmatpush.msrb.mxu0 %v725_v7  ;;  %539 = vmatpush.msrb.mxu1 %v730_v8 }
  0x2d   :  { %506 = vmatpush.msra.mxu3 %v853_v29  ;;  %487 = vmatpush.msra.mxu2 %v864_v30 }
  0x2e   :  { %520 = vmatpush.msrb.mxu0 %v735_v9  ;;  %540 = vmatpush.msrb.mxu1 %v740_v10 }
  0x2f   :  { %507 = vmatpush.msra.mxu3 %v869_v31  ;;  %488 = vmatpush.msra.mxu2 %v406_v32 }
  0x30   :  { %521 = vmatpush.msrb.mxu0 %v750_v12  ;;  %541 = vmatpush.msrb.mxu1 %v755_v13 }
  0x31   :  { %508 = vmatpush.msra.mxu3 %v422_v33  ;;  %489 = vmatpush.msra.mxu2 %v405_v34 }
  0x32   :  { %522 = vmatpush.msrb.mxu0 %v762_v14  ;;  %542 = vmatpush.msrb.mxu1 %v767_v15 }
  0x33   :  { %509 = vmatpush.msra.mxu3 %v421_v35  ;;  %490 = vmatpush.msra.mxu2 %v404_v36 }
  0x34   :  { %523 = vmatpush.msrb.mxu0 %v774_v16  ;;  %543 = vmatpush.msrb.mxu1 %v779_v17 }
  0x35   :  { %510 = vmatpush.msra.mxu3 %v420_v37  ;;  %491 = vmatpush.msra.mxu2 %v914_v38 }
  0x36   :  { %524 = vmatpush.msrb.mxu0 %v791_v19  ;;  %544 = vmatpush.msrb.mxu1 %v796_v20  ;;  %v622_v20 = vld [vmem:[%s1031_s2 + $0x7] ss:$0 sm:$0xff] }
  0x37   :  { %511 = vmatpush.msra.mxu3 %v919_v39 }
  0x38   :  { %525 = vmatpush.msrb.mxu0 %v805_v21  ;;  %545 = vmatpush.msrb.mxu1 %v810_v22  ;;  %v624_v21 = vld [vmem:[%s1032_s3 + $0x7] ss:$0 sm:$0xff]  ;;  %v623_v22 = vld [vmem:[%s1031_s2 + $0x8] ss:$0 sm:$0xff] }
  0x3a   :  { %526 = vmatpush.msrb.mxu0 %v817_v23  ;;  %546 = vmatpush.msrb.mxu1 %v822_v24 }
  0x3c   :  { %527 = vmatpush.msrb.mxu0 %v831_v25  ;;  %547 = vmatpush.msrb.mxu1 %v836_v26  ;;  %v626_v25 = vld [vmem:[%s1031_s2 + $0x6] ss:$0 sm:$0xff] }
  0x3e   :  { %528 = vmatpush.msrb.mxu0 %v848_v28  ;;  %548 = vmatpush.msrb.mxu1 %v853_v29  ;;  %v627_v28 = vld [vmem:[%s1032_s3 + $0x6] ss:$0 sm:$0xff] }
  0x40   :  { %529 = vmatpush.msrb.mxu0 %v864_v30  ;;  %549 = vmatpush.msrb.mxu1 %v869_v31 }
  0x42   :  { %530 = vmatpush.msrb.mxu0 %v406_v32  ;;  %550 = vmatpush.msrb.mxu1 %v422_v33 }
  0x44   :  { %531 = vmatpush.msrb.mxu0 %v405_v34  ;;  %551 = vmatpush.msrb.mxu1 %v421_v35 }
  0x46   :  { %532 = vmatpush.msrb.mxu0 %v404_v36  ;;  %552 = vmatpush.msrb.mxu1 %v420_v37 }
  0x48   :  { %533 = vmatpush.msrb.mxu0 %v914_v38  ;;  %553 = vmatpush.msrb.mxu1 %v919_v39 }
  0x88   :  { %v47_v40 = vpop.f32.mrf.mxu2  ;;  %v67_v41 = vpop.f32.mrf.mxu3 }
  0x89   :  { %v85_v49 = vmul.f32 %v610_v42, %v47_v40  ;;  %v86_v50 = vmul.f32 %v611_v43, %v47_v40  ;;  %v87_v51 = vmul.f32 %v612_v44, %v47_v40  ;;  %v107_v52 = vmul.f32 %v614_v45, %v47_v40 }
  0x8a   :  { %v100_v56 = vmul.f32 %v613_v46, %v67_v41  ;;  %v101_v57 = vmul.f32 %v614_v45, %v67_v41  ;;  %v102_v58 = vmul.f32 %v615_v47, %v67_v41  ;;  %v113_v59 = vmul.f32 %v611_v43, %v67_v41  ;;  %v625_v43 = vld [vmem:[%s1032_s3 + $0x8] ss:$0 sm:$0xff] }
  0x8b   :  { %v106_v60 = vmul.f32 %v613_v46, %v47_v40  ;;  %v108_v61 = vmul.f32 %v615_v47, %v47_v40  ;;  %v112_v62 = vmul.f32 %v610_v42, %v67_v41  ;;  %v114_v63 = vmul.f32 %v612_v44, %v67_v41 }
  0x8c   :  { %v104_v8 = vsub.f32 %v86_v50, %v101_v57  ;;  %v105_v9 = vsub.f32 %v87_v51, %v102_v58  ;;  %v116_v10 = vadd.f32 %v113_v59, %v107_v52  ;;  %v103_v11 = vsub.f32 %v85_v49, %v100_v56  ;;  %v628_v52 = vld [vmem:[%s1031_s2 + $0x9] ss:$0 sm:$0xff]  ;;  %v630_v56 = vld [vmem:[%s1031_s2 + $0xa] ss:$0 sm:$0xff] }
  0x8d   :  { %v117_v12 = vadd.f32 %v114_v63, %v108_v61  ;;  %v115_v15 = vadd.f32 %v112_v62, %v106_v60  ;;  %v631_v57 = vld [vmem:[%s1032_s3 + $0xa] ss:$0 sm:$0xff] }
  0x90   :  { %v140_v0 = vpop.f32.mrf.mxu2  ;;  %v160_v3 = vpop.f32.mrf.mxu3 }
  0x91   :  { %v181_v4 = vmul.f32 %v617_v48, %v140_v0  ;;  %v180_v5 = vmul.f32 %v616_v53, %v140_v0  ;;  %v201_v6 = vmul.f32 %v619_v54, %v140_v0  ;;  %v202_v7 = vmul.f32 %v620_v55, %v140_v0 }
  0x92   :  { %v182_v13 = vmul.f32 %v618_v1, %v140_v0  ;;  %v203_v14 = vmul.f32 %v621_v2, %v140_v0  ;;  %v196_v18 = vmul.f32 %v620_v55, %v160_v3  ;;  %v208_v19 = vmul.f32 %v617_v48, %v160_v3 }
  0x93   :  { %v184_v16 = vadd.f32 %v181_v4, %v104_v8  ;;  %v205_v17 = vadd.f32 %v202_v7, %v116_v10  ;;  %v183_v23 = vadd.f32 %v180_v5, %v103_v11  ;;  %v195_v24 = vmul.f32 %v619_v54, %v160_v3  ;;  %v632_v8 = vld [vmem:[%s1031_s2 + $0xb] ss:$0 sm:$0xff]  ;;  %s660_s2 = smov [#allocation2]  }
  0x94   :  { %v204_v26 = vadd.f32 %v201_v6, %v115_v15  ;;  %v207_v27 = vmul.f32 %v616_v53, %v160_v3  ;;  %v185_v29 = vadd.f32 %v182_v13, %v105_v9  ;;  %v206_v30 = vadd.f32 %v203_v14, %v117_v12  ;;  %v629_v53 = vld [vmem:[%s1032_s3 + $0x9] ss:$0 sm:$0xff]  ;;  %v633_v9 = vld [vmem:[%s1032_s3 + $0xb] ss:$0 sm:$0xff]  ;;  %s564_s3 = sshll.u32 %s660_s2, 4  ;;  %s565_s3 = int_to_ptr.vmem [resolvable:$true] %s564_s3 }
  0x95   :  { %v197_v31 = vmul.f32 %v621_v2, %v160_v3  ;;  %v209_v32 = vmul.f32 %v618_v1, %v160_v3  ;;  %v199_v35 = vsub.f32 %v184_v16, %v196_v18  ;;  %v211_v36 = vadd.f32 %v208_v19, %v205_v17 }
  0x96   :  { %v198_v40 = vsub.f32 %v183_v23, %v195_v24  ;;  %v210_v42 = vadd.f32 %v207_v27, %v204_v26 }
  0x97   :  { %v200_v55 = vsub.f32 %v185_v29, %v197_v31  ;;  %v212_v61 = vadd.f32 %v209_v32, %v206_v30 }
  0x98   :  { %v235_v33 = vpop.f32.mrf.mxu2  ;;  %v255_v34 = vpop.f32.mrf.mxu3 }
  0x99   :  { %v276_v37 = vmul.f32 %v622_v20, %v235_v33  ;;  %v297_v38 = vmul.f32 %v624_v21, %v235_v33  ;;  %v277_v39 = vmul.f32 %v623_v22, %v235_v33  ;;  %v275_v41 = vmul.f32 %v626_v25, %v235_v33 }
  0x9a   :  { %v291_v44 = vmul.f32 %v624_v21, %v255_v34  ;;  %v303_v45 = vmul.f32 %v622_v20, %v255_v34  ;;  %v290_v46 = vmul.f32 %v627_v28, %v255_v34  ;;  %v296_v47 = vmul.f32 %v627_v28, %v235_v33 }
  0x9b   :  { %v278_v48 = vadd.f32 %v275_v41, %v198_v40  ;;  %v302_v49 = vmul.f32 %v626_v25, %v255_v34  ;;  %v279_v50 = vadd.f32 %v276_v37, %v199_v35  ;;  %v300_v51 = vadd.f32 %v297_v38, %v211_v36 }
  0x9c   :  { %v299_v54 = vadd.f32 %v296_v47, %v210_v42  ;;  %v298_v58 = vmul.f32 %v625_v43, %v235_v33  ;;  %v280_v59 = vadd.f32 %v277_v39, %v200_v55  ;;  %v292_v60 = vmul.f32 %v625_v43, %v255_v34 }
  0x9d   :  { %v293_v0 = vsub.f32 %v278_v48, %v290_v46  ;;  %v294_v2 = vsub.f32 %v279_v50, %v291_v44  ;;  %v306_v3 = vadd.f32 %v303_v45, %v300_v51  ;;  %v304_v17 = vmul.f32 %v623_v22, %v255_v34 }
  0x9e   :  { %v305_v1 = vadd.f32 %v302_v49, %v299_v54  ;;  %v301_v16 = vadd.f32 %v298_v58, %v212_v61  ;;  %v295_v27 = vsub.f32 %v280_v59, %v292_v60 }
  0xa0   :  { %v330_v62 = vpop.f32.mrf.mxu2  ;;  %v350_v63 = vpop.f32.mrf.mxu3  ;;  %v307_v28 = vadd.f32 %v304_v17, %v301_v16 }
  0xa1   :  { %v370_v4 = vmul.f32 %v628_v52, %v330_v62  ;;  %v385_v5 = vmul.f32 %v629_v53, %v350_v63  ;;  %v391_v6 = vmul.f32 %v629_v53, %v330_v62  ;;  %v397_v7 = vmul.f32 %v628_v52, %v350_v63 }
  0xa2   :  { %v371_v10 = vmul.f32 %v630_v56, %v330_v62  ;;  %v386_v11 = vmul.f32 %v631_v57, %v350_v63  ;;  %v392_v12 = vmul.f32 %v631_v57, %v330_v62  ;;  %v398_v13 = vmul.f32 %v630_v56, %v350_v63 }
  0xa3   :  { %v373_v14 = vadd.f32 %v370_v4, %v293_v0  ;;  %v394_v15 = vadd.f32 %v391_v6, %v305_v1  ;;  %v372_v23 = vmul.f32 %v632_v8, %v330_v62  ;;  %v393_v24 = vmul.f32 %v633_v9, %v330_v62 }
  0xa4   :  { %v374_v18 = vadd.f32 %v371_v10, %v294_v2  ;;  %v395_v19 = vadd.f32 %v392_v12, %v306_v3  ;;  %v387_v30 = vmul.f32 %v633_v9, %v350_v63  ;;  %v399_v32 = vmul.f32 %v632_v8, %v350_v63 }
  0xa5   :  { %v388_v20 = vsub.f32 %v373_v14, %v385_v5  ;;  %v400_v21 = vadd.f32 %v397_v7, %v394_v15  ;;  %v375_v29 = vadd.f32 %v372_v23, %v295_v27  ;;  %v396_v31 = vadd.f32 %v393_v24, %v307_v28 }
  0xa6   :  { %v389_v25 = vsub.f32 %v374_v18, %v386_v11  ;;  %v401_v26 = vadd.f32 %v398_v13, %v395_v19 }
  0xa7   :  { %451 = vmatmul.f32.vlgmr.msra.gmra.mxu0 %v388_v20  ;;  %471 = vmatmul.f32.vlgmr.msra.gmra.mxu1 %v400_v21  ;;  %v390_v33 = vsub.f32 %v375_v29, %v387_v30  ;;  %v402_v22 = vadd.f32 %v399_v32, %v396_v31 }
  0xa8   :  { %492 = vmatmul.f32.vlgmr.msra.gmra.mxu2 %v389_v25  ;;  %512 = vmatmul.f32.vlgmr.msra.gmra.mxu3 %v401_v26 }
  0xaf   :  { %534 = vmatmul.f32.vlgmr.msrb.gmra.mxu0 %v390_v33  ;;  %554 = vmatmul.f32.vlgmr.msrb.gmra.mxu1 %v402_v22 }
 0x124   :  { %v452_v34 = vpop.f32.mrf.mxu0  ;;  %v472_v35 = vpop.f32.mrf.mxu1 }
 0x125   :  { %v473_v36 = vadd.f32 %v472_v35, %v452_v34 }
 0x127   :  { %475 = vst.msk [vmem:[#allocation2] sm:$0xff] %vm26_vm0, %v473_v36 }
 0x12b   :  { %v493_v37 = vpop.f32.mrf.mxu2  ;;  %v513_v38 = vpop.f32.mrf.mxu3 }
 0x12c   :  { %v514_v39 = vadd.f32 %v513_v38, %v493_v37  ;;  %v535_v40 = vpop.f32.mrf.mxu0  ;;  %v555_v41 = vpop.f32.mrf.mxu1 }
 0x12d   :  { %v556_v42 = vadd.f32 %v555_v41, %v535_v40 }
 0x12e   :  { %517 = vst.msk [vmem:[#allocation2 + $0x8] sm:$0xff] %vm26_vm0, %v514_v39 }
 0x12f   :  { %559 = vst.msk [vmem:[#allocation2 + $0x10] sm:$0xff] %vm26_vm0, %v556_v42 }
 0x130   :  { %572 = dma.vmem_to_hbm [thread:$0]  %s565_s3, 384, %s567_s13, [#allocation3], %s661_s14, %s661_s14, %s662_s15  }
 0x131   :  { %658 = dma.done.wait [#allocation3], 384  }
 0x132   :  { %659 = vsyncadd [#allocation3], 4294966912 }
 0x133   :  { %577 = vsyncpa [#allocation3], 1 }

</bundles_post_ra>
